<compile_context>
chip_gen: v7x
topology: tpu7x:2x2x1
jax: 0.10.0
libtpu: 0.0.40
codegen_flags: <defaults>
</compile_context>

<pallas_src>
import jax
import jax.numpy as jnp
from jax.experimental import pallas as pl
from jax.experimental.pallas import tpu as pltpu


time_index = {'t_s': 0, 't_s_orig': 1, 't_e': 2, 't_e_orig': 3, 't_str': 4, 't_i': 5}

DEFAULT_CAND_TILE = 4096   # candidate-axis tile for the streamed 1-vs-all tables
POINTWISE_TB = 512         # batch tile for the fused pointwise kernel


def _round_up(x, m):
    return (x + m - 1) // m * m


def _pick_candidate_tile(n, max_tile=DEFAULT_CAND_TILE):
    """Largest tile (multiple of 128, <= max_tile) whose one-time zero padding of the
    candidate axis wastes at most ~12.5% of the streamed HBM bytes."""
    t = max_tile
    while t > 128:
        padded = _round_up(n, t)
        if (padded - n) * 8 <= padded:
            return t
        t //= 2
    return 128


# ----------------------------------------------------------------------------
# Kernel 1: fused pointwise temporal-ComplEx score
#   r_t = r (*) t + r_no_time ; score = Re(<s, r_t, conj(o)>)
# ----------------------------------------------------------------------------
def _tnt_pointwise_kernel(s_re, s_im, r_re, r_im, rn_re, rn_im,
                          t_re, t_im, o_re, o_im, out_ref):
    f32 = jnp.float32
    sre, sim = s_re[...].astype(f32), s_im[...].astype(f32)
    ore, oim = o_re[...].astype(f32), o_im[...].astype(f32)
    tre, tim = t_re[...].astype(f32), t_im[...].astype(f32)
    rre, rim = r_re[...].astype(f32), r_im[...].astype(f32)
    rr = rre * tre - rim * tim + rn_re[...].astype(f32)
    ri = rre * tim + rim * tre + rn_im[...].astype(f32)
    sc = sre * (rr * ore + ri * oim) + sim * (rr * oim - ri * ore)
    out_ref[...] = jnp.sum(sc, axis=-1, keepdims=True)


def tnt_pointwise_score(s_re, s_im, r_re, r_im, rn_re, rn_im,
                        t_re, t_im, o_re, o_im, *, tb=POINTWISE_TB):
    """All inputs (B, Dp); returns (B,) f32 scores.  Tiled + pipelined over B."""
    B, D = s_re.shape
    tb = min(tb, _round_up(B, 8))
    ins = [s_re, s_im, r_re, r_im, rn_re, rn_im, t_re, t_im, o_re, o_im]
    if B % tb:   # fallback only; forward() pads the index arrays instead.
        Bp = _round_up(B, tb)
        ins = [jnp.pad(x, ((0, Bp - B), (0, 0))) for x in ins]
    Bp = ins[0].shape[0]
    out = pl.pallas_call(
        _tnt_pointwise_kernel,
        out_shape=jax.ShapeDtypeStruct((Bp, 1), jnp.float32),
        grid_spec=pltpu.PrefetchScalarGridSpec(
            num_scalar_prefetch=0,
            grid=(Bp // tb,),
            in_specs=[pl.BlockSpec((tb, D), lambda i: (i, 0)) for _ in range(10)],
            out_specs=pl.BlockSpec((tb, 1), lambda i: (i, 0)),
        ),
        compiler_params=pltpu.CompilerParams(
            dimension_semantics=("parallel",),
            vmem_limit_bytes=32 << 20),
    )(*ins)
    return out[:B, 0]


# ----------------------------------------------------------------------------
# Kernel 2: 1-vs-all scoring (against all entities or all time points)
#   score[b, n] = q_cat[b] . W_cat[:, n] + bias[b]
#   W_cat is the pre-transposed, re/im-concatenated bf16 table (K = 2*Dp rows).
# ----------------------------------------------------------------------------
def _vs_all_kernel(q_ref, bias_ref, w_ref, out_ref):
    out_ref[...] = (jnp.dot(q_ref[...], w_ref[...],
                            preferred_element_type=jnp.float32)
                    + bias_ref[...])


def complex_vs_all_score(q_cat, bias, w_cat_t, *, n_valid, tn, tb=256):
    """q_cat: (B, K) bf16; bias: (B, 1) f32; w_cat_t: (K, Np) bf16 with Np % tn == 0.

    Grid = (candidate tiles OUTER, batch tiles INNER): each streamed W tile is DMA'd
    from HBM exactly once (its block index is constant over the inner batch axis),
    while the tiny q / bias tiles are re-fetched.  Output tiles (tb, tn) are
    lane-dense, tn is a multiple of 128.
    """
    B, K = q_cat.shape
    Np = w_cat_t.shape[1]
    assert Np % tn == 0, "candidate table must be pre-padded to a multiple of tn"
    tb = min(tb, _round_up(B, 8))
    Bp = _round_up(B, tb)
    if Bp != B:      # only the tiny query/bias get padded, never the big table
        q_cat = jnp.pad(q_cat, ((0, Bp - B), (0, 0)))
        bias = jnp.pad(bias, ((0, Bp - B), (0, 0)))
    out = pl.pallas_call(
        _vs_all_kernel,
        out_shape=jax.ShapeDtypeStruct((Bp, Np), jnp.float32),
        grid_spec=pltpu.PrefetchScalarGridSpec(
            num_scalar_prefetch=0,
            grid=(Np // tn, Bp // tb),          # candidate outer, batch inner
            in_specs=[
                pl.BlockSpec((tb, K), lambda j, b: (b, 0)),    # query
                pl.BlockSpec((tb, 1), lambda j, b: (b, 0)),    # bias
                pl.BlockSpec((K, tn), lambda j, b: (0, j)),    # streamed table tile
                # TODO(synk): if profiles still show exposed DMA waits, add
                # pipeline_mode=pl.Buffered(3) to the streamed table spec.
            ],
            out_specs=pl.BlockSpec((tb, tn), lambda j, b: (b, j)),
        ),
        # TODO(synk): on v7x verify the "parallel" axes shard across both TensorCores
        # (xprof); otherwise switch to pltpu.CORE_PARALLEL / pl.core_map.
        compiler_params=pltpu.CompilerParams(
            dimension_semantics=("parallel", "parallel"),
            vmem_limit_bytes=32 << 20),
    )(q_cat, bias, w_cat_t)
    return out[:B, :n_valid]


# ----------------------------------------------------------------------------
# Module wrapper (parameter init + embedding gathers are plain-JAX glue)
# ----------------------------------------------------------------------------
class TNTComplexLx:
    def __init__(self, entity_count, relation_count, timeInterval_count,
                 embedding_dim, key):
        self.entity_count = entity_count
        self.relation_count = relation_count
        self.timeInterval_count = timeInterval_count
        self.embedding_dim = embedding_dim
        # pad D to a multiple of 128 (zero columns are score-neutral)
        self.dim_pad = _round_up(embedding_dim, 128)
        Dp = self.dim_pad

        ks = jax.random.split(key, 8)

        def init(k, n):   # torch.nn.init.normal_(w, 0, 0.05)
            w = 0.05 * jax.random.normal(k, (n, embedding_dim), dtype=jnp.float32)
            return jnp.pad(w, ((0, 0), (0, Dp - embedding_dim)))

        # Big tables in bf16 (halves HBM traffic on the memory-bound 1-vs-all path);
        # relation tables stay f32 (only ever gathered per-batch).
        self.E_re = init(ks[0], entity_count).astype(jnp.bfloat16)
        self.E_im = init(ks[1], entity_count).astype(jnp.bfloat16)
        self.R_re = init(ks[2], 2 * relation_count)
        self.R_im = init(ks[3], 2 * relation_count)
        self.R_no_time_re = init(ks[4], 2 * relation_count)
        self.R_no_time_im = init(ks[5], 2 * relation_count)
        self.T_re = init(ks[6], timeInterval_count + 2).astype(jnp.bfloat16)
        self.T_im = init(ks[7], timeInterval_count + 2).astype(jnp.bfloat16)

        # --- pre-built candidate tables for the streamed 1-vs-all kernels ---
        # one-time: re/im concat (K = 2*Dp), candidate-axis zero pad to a tile
        # multiple, transpose to (K, Np), cast bf16.  Never padded again per call.
        self.ent_tile = _pick_candidate_tile(entity_count)
        ne_pad = _round_up(entity_count, self.ent_tile)
        e_cat = jnp.concatenate([self.E_re, self.E_im], axis=-1).astype(jnp.float32)
        e_cat = jnp.pad(e_cat, ((0, ne_pad - entity_count), (0, 0)))
        self.E_cat_T = e_cat.T.astype(jnp.bfloat16)            # (2*Dp, ne_pad)

        n_time = timeInterval_count                            # drop 2 padding rows
        self.time_tile = _pick_candidate_tile(n_time)
        nt_pad = _round_up(n_time, self.time_tile)
        t_cat = jnp.concatenate([self.T_re[:n_time], self.T_im[:n_time]],
                                axis=-1).astype(jnp.float32)
        t_cat = jnp.pad(t_cat, ((0, nt_pad - n_time), (0, 0)))
        self.T_cat_T = t_cat.T.astype(jnp.bfloat16)            # (2*Dp, nt_pad)

    # TODO(synk): gathers could be fused into the kernels via scalar-prefetched index
    # arrays (PrefetchScalarGridSpec + pl.Element); kept as XLA gathers for clarity.
    def _gather(self, table, idx):
        return jnp.take(table, jnp.asarray(idx).reshape(-1).astype(jnp.int32),
                        axis=0).astype(jnp.float32)

    def forward(self, s, r, o, t, flag_debug=0):
        # --- time-index extraction, mirroring the reference code ---
        if t is not None:
            t = jnp.asarray(t)
            if t.shape[-1] == len(time_index):
                t = t[:, :, time_index['t_s']]
            else:
                t = t[:, time_index['t_s'], :]

        r_idx = jnp.asarray(r).reshape(-1).astype(jnp.int32)
        B = r_idx.shape[0]

        if t is None:
            # --- score every time point (forward + inverse relation), factored as
            #     q_cat @ [T_re|T_im]^T + bias, streamed through the MXU kernel.
            r_re, r_im = self._gather(self.R_re, r_idx), self._gather(self.R_im, r_idx)
            rn_re = self._gather(self.R_no_time_re, r_idx)
            rn_im = self._gather(self.R_no_time_im, r_idx)
            s_re, s_im = self._gather(self.E_re, s), self._gather(self.E_im, s)
            o_re, o_im = self._gather(self.E_re, o), self._gather(self.E_im, o)
            P = s_re * o_re + s_im * o_im
            Q = s_re * o_im - s_im * o_re
            q_re = r_re * P + r_im * Q
            q_im = r_re * Q - r_im * P
            bias = jnp.sum(rn_re * P + rn_im * Q, axis=-1, keepdims=True)
            # inverse direction (mirrors `r + relation_count / 2` in the reference;
            # the 2*relation_count-row tables make this index always in range)
            ri_idx = r_idx + self.relation_count // 2
            ri_re, ri_im = self._gather(self.R_re, ri_idx), self._gather(self.R_im, ri_idx)
            rni_re = self._gather(self.R_no_time_re, ri_idx)
            rni_im = self._gather(self.R_no_time_im, ri_idx)
            q_re = q_re + ri_re * P - ri_im * Q
            q_im = q_im - ri_re * Q - ri_im * P
            bias = bias + jnp.sum(rni_re * P - rni_im * Q, axis=-1, keepdims=True)
            q_cat = jnp.concatenate([q_re, q_im], axis=-1).astype(jnp.bfloat16)
            return complex_vs_all_score(q_cat, bias, self.T_cat_T,
                                        n_valid=self.timeInterval_count,
                                        tn=self.time_tile)

        if s is not None and o is not None and jnp.shape(s) == jnp.shape(o):
            # --- pointwise scoring: fused elementwise Pallas kernel.
            # Pad the tiny *index* arrays (not 10 (B, D) operands) to a tile multiple.
            tb = min(POINTWISE_TB, _round_up(B, 8))
            Bp = _round_up(B, tb)
            pad = Bp - B

            def pad_idx(x):
                x = jnp.asarray(x).reshape(-1).astype(jnp.int32)
                return jnp.pad(x, (0, pad)) if pad else x

            s_i, o_i, r_i, t_i = pad_idx(s), pad_idx(o), pad_idx(r_idx), pad_idx(t)
            args = (
                jnp.take(self.E_re, s_i, axis=0), jnp.take(self.E_im, s_i, axis=0),
                jnp.take(self.R_re, r_i, axis=0), jnp.take(self.R_im, r_i, axis=0),
                jnp.take(self.R_no_time_re, r_i, axis=0),
                jnp.take(self.R_no_time_im, r_i, axis=0),
                jnp.take(self.T_re, t_i, axis=0), jnp.take(self.T_im, t_i, axis=0),
                jnp.take(self.E_re, o_i, axis=0), jnp.take(self.E_im, o_i, axis=0),
            )
            scores = tnt_pointwise_score(*args, tb=tb)[:B]
            return scores.reshape(jnp.shape(s))

        # --- 1-vs-all over entities: tiny (B, D) query built in XLA, candidate table
        # streamed exactly once through the MXU kernel.
        r_re, r_im = self._gather(self.R_re, r_idx), self._gather(self.R_im, r_idx)
        rn_re = self._gather(self.R_no_time_re, r_idx)
        rn_im = self._gather(self.R_no_time_im, r_idx)
        t_re, t_im = self._gather(self.T_re, t), self._gather(self.T_im, t)
        rr_t = r_re * t_re - r_im * t_im + rn_re
        ri_t = r_re * t_im + r_im * t_re + rn_im
        if o is None:        # predict object
            s_re, s_im = self._gather(self.E_re, s), self._gather(self.E_im, s)
            q_re = s_re * rr_t - s_im * ri_t
            q_im = s_re * ri_t + s_im * rr_t
        else:                # s is None -> predict subject
            o_re, o_im = self._gather(self.E_re, o), self._gather(self.E_im, o)
            q_re = o_re * rr_t + o_im * ri_t
            q_im = o_im * rr_t - o_re * ri_t
        q_cat = jnp.concatenate([q_re, q_im], axis=-1).astype(jnp.bfloat16)
        bias = jnp.zeros((B, 1), jnp.float32)
        return complex_vs_all_score(q_cat, bias, self.E_cat_T,
                                    n_valid=self.entity_count, tn=self.ent_tile)


# ----------------------------------------------------------------------------
# Driver / self-check
# ----------------------------------------------------------------------------
if __name__ == "__main__":
    key = jax.random.PRNGKey(0)
    k_model, k_s, k_r, k_o, k_t = jax.random.split(key, 5)

    entity_count, relation_count, timeInterval_count = 256, 32, 16
    embedding_dim = 96           # deliberately not a multiple of 128 (padded at init)
    B = 8

    model = TNTComplexLx(entity_count, relation_count, timeInterval_count,
                         embedding_dim, k_model)

    s = jax.random.randint(k_s, (B, 1), 0, entity_count, dtype=jnp.int32)
    r = jax.random.randint(k_r, (B, 1), 0, relation_count // 2, dtype=jnp.int32)
    o = jax.random.randint(k_o, (B, 1), 0, entity_count, dtype=jnp.int32)
    t_s = jax.random.randint(k_t, (B, 1), 0, timeInterval_count, dtype=jnp.int32)
    # full (B, 1, 6) time tensor as in the reference; only the t_s column is used
    t_full = jnp.tile(t_s[:, :, None], (1, 1, len(time_index)))

    # ---- plain-JAX reference pieces (same bf16 tables, upcast to f32) ----
    def f32(x):
        return x.astype(jnp.float32)

    def gat(W, idx):
        return f32(jnp.take(W, jnp.asarray(idx).reshape(-1), axis=0))

    s_re, s_im = gat(model.E_re, s), gat(model.E_im, s)
    o_re, o_im = gat(model.E_re, o), gat(model.E_im, o)
    r_re, r_im = gat(model.R_re, r), gat(model.R_im, r)
    rn_re, rn_im = gat(model.R_no_time_re, r), gat(model.R_no_time_im, r)
    t_re, t_im = gat(model.T_re, t_s), gat(model.T_im, t_s)
    rr_t = r_re * t_re - r_im * t_im + rn_re
    ri_t = r_re * t_im + r_im * t_re + rn_im

    # --- path 1: pointwise (s, r, o, t all given) ---
    out_point = jax.block_until_ready(model.forward(s, r, o, t_full))
    ref_point = jnp.sum(s_re * (rr_t * o_re + ri_t * o_im)
                        + s_im * (rr_t * o_im - ri_t * o_re), axis=-1)
    assert out_point.shape == (B, 1)
    assert jnp.allclose(out_point.reshape(-1), ref_point, atol=1e-5, rtol=1e-3)

    # --- path 2: 1-vs-all over entities (o is None) ---
    out_all = jax.block_until_ready(model.forward(s, r, None, t_full))
    q_re_ref = s_re * rr_t - s_im * ri_t
    q_im_ref = s_re * ri_t + s_im * rr_t
    q_cat_ref = f32(jnp.concatenate([q_re_ref, q_im_ref], -1).astype(jnp.bfloat16))
    E_cat_ref = f32(jnp.concatenate([model.E_re, model.E_im], -1))
    ref_all = q_cat_ref @ E_cat_ref.T
    assert out_all.shape == (B, entity_count)
    assert jnp.allclose(out_all, ref_all, atol=1e-4, rtol=1e-3)

    # --- path 2b: 1-vs-all over entities (s is None, predict subject) ---
    out_subj = jax.block_until_ready(model.forward(None, r, o, t_full))
    qs_re = o_re * rr_t + o_im * ri_t
    qs_im = o_im * rr_t - o_re * ri_t
    qs_cat = f32(jnp.concatenate([qs_re, qs_im], -1).astype(jnp.bfloat16))
    ref_subj = qs_cat @ E_cat_ref.T
    assert out_subj.shape == (B, entity_count)
    assert jnp.allclose(out_subj, ref_subj, atol=1e-4, rtol=1e-3)

    # --- path 3: all time points (t is None), forward + inverse relation ---
    out_time = jax.block_until_ready(model.forward(s, r, o, None))
    T_re_all = f32(model.T_re[:timeInterval_count])
    T_im_all = f32(model.T_im[:timeInterval_count])

    def score_all_t(a_re, a_im, rre, rim, rnre, rnim, b_re, b_im):
        Rre = (rre[:, None, :] * T_re_all[None] - rim[:, None, :] * T_im_all[None]
               + rnre[:, None, :])
        Rim = (rre[:, None, :] * T_im_all[None] + rim[:, None, :] * T_re_all[None]
               + rnim[:, None, :])
        return jnp.sum(a_re[:, None, :] * (Rre * b_re[:, None, :] + Rim * b_im[:, None, :])
                       + a_im[:, None, :] * (Rre * b_im[:, None, :] - Rim * b_re[:, None, :]),
                       axis=-1)

    r_inv = jnp.asarray(r).reshape(-1) + relation_count // 2
    ri_re, ri_im = gat(model.R_re, r_inv), gat(model.R_im, r_inv)
    rni_re, rni_im = gat(model.R_no_time_re, r_inv), gat(model.R_no_time_im, r_inv)
    ref_time = (score_all_t(s_re, s_im, r_re, r_im, rn_re, rn_im, o_re, o_im)
                + score_all_t(o_re, o_im, ri_re, ri_im, rni_re, rni_im, s_re, s_im))
    assert out_time.shape == (B, timeInterval_count)
    assert jnp.allclose(out_time, ref_time, atol=5e-5, rtol=1e-2)

    print("KERNEL_OK")
</pallas_src>

<mosaic_0001>
module attributes {stable_mosaic.version = 11 : i64} {
  func.func @_tnt_pointwise_kernel(%arg0: i32, %arg1: memref<8x128xbf16, #tpu.memory_space<vmem>>, %arg2: memref<8x128xbf16, #tpu.memory_space<vmem>>, %arg3: memref<8x128xf32, #tpu.memory_space<vmem>>, %arg4: memref<8x128xf32, #tpu.memory_space<vmem>>, %arg5: memref<8x128xf32, #tpu.memory_space<vmem>>, %arg6: memref<8x128xf32, #tpu.memory_space<vmem>>, %arg7: memref<8x128xbf16, #tpu.memory_space<vmem>>, %arg8: memref<8x128xbf16, #tpu.memory_space<vmem>>, %arg9: memref<8x128xbf16, #tpu.memory_space<vmem>>, %arg10: memref<8x128xbf16, #tpu.memory_space<vmem>>, %arg11: memref<8x1xf32, #tpu.memory_space<vmem>>) attributes {dimension_semantics = [#tpu.dimension_semantics<parallel>], iteration_bounds = array<i64: 1>, scalar_prefetch = 0 : i64, scratch_operands = 0 : i64, tpu.core_type = #tpu.core_type<tc>, window_params = [{transform_indices = @transform_0, window_bounds = array<i64: 8, 128>}, {transform_indices = @transform_1, window_bounds = array<i64: 8, 128>}, {transform_indices = @transform_2, window_bounds = array<i64: 8, 128>}, {transform_indices = @transform_3, window_bounds = array<i64: 8, 128>}, {transform_indices = @transform_4, window_bounds = array<i64: 8, 128>}, {transform_indices = @transform_5, window_bounds = array<i64: 8, 128>}, {transform_indices = @transform_6, window_bounds = array<i64: 8, 128>}, {transform_indices = @transform_7, window_bounds = array<i64: 8, 128>}, {transform_indices = @transform_8, window_bounds = array<i64: 8, 128>}, {transform_indices = @transform_9, window_bounds = array<i64: 8, 128>}, {transform_indices = @transform_10, window_bounds = array<i64: 8, 1>}]} {
    %c0 = arith.constant 0 : index
    %c0_0 = arith.constant 0 : index
    %0 = vector.load %arg1[%c0, %c0_0] : memref<8x128xbf16, #tpu.memory_space<vmem>>, vector<8x128xbf16>
    %1 = arith.extf %0 : vector<8x128xbf16> to vector<8x128xf32>
    %c0_1 = arith.constant 0 : index
    %c0_2 = arith.constant 0 : index
    %2 = vector.load %arg2[%c0_1, %c0_2] : memref<8x128xbf16, #tpu.memory_space<vmem>>, vector<8x128xbf16>
    %3 = arith.extf %2 : vector<8x128xbf16> to vector<8x128xf32>
    %c0_3 = arith.constant 0 : index
    %c0_4 = arith.constant 0 : index
    %4 = vector.load %arg9[%c0_3, %c0_4] : memref<8x128xbf16, #tpu.memory_space<vmem>>, vector<8x128xbf16>
    %5 = arith.extf %4 : vector<8x128xbf16> to vector<8x128xf32>
    %c0_5 = arith.constant 0 : index
    %c0_6 = arith.constant 0 : index
    %6 = vector.load %arg10[%c0_5, %c0_6] : memref<8x128xbf16, #tpu.memory_space<vmem>>, vector<8x128xbf16>
    %7 = arith.extf %6 : vector<8x128xbf16> to vector<8x128xf32>
    %c0_7 = arith.constant 0 : index
    %c0_8 = arith.constant 0 : index
    %8 = vector.load %arg7[%c0_7, %c0_8] : memref<8x128xbf16, #tpu.memory_space<vmem>>, vector<8x128xbf16>
    %9 = arith.extf %8 : vector<8x128xbf16> to vector<8x128xf32>
    %c0_9 = arith.constant 0 : index
    %c0_10 = arith.constant 0 : index
    %10 = vector.load %arg8[%c0_9, %c0_10] : memref<8x128xbf16, #tpu.memory_space<vmem>>, vector<8x128xbf16>
    %11 = arith.extf %10 : vector<8x128xbf16> to vector<8x128xf32>
    %c0_11 = arith.constant 0 : index
    %c0_12 = arith.constant 0 : index
    %12 = vector.load %arg3[%c0_11, %c0_12] : memref<8x128xf32, #tpu.memory_space<vmem>>, vector<8x128xf32>
    %c0_13 = arith.constant 0 : index
    %c0_14 = arith.constant 0 : index
    %13 = vector.load %arg4[%c0_13, %c0_14] : memref<8x128xf32, #tpu.memory_space<vmem>>, vector<8x128xf32>
    %14 = arith.mulf %12, %9 : vector<8x128xf32>
    %15 = arith.mulf %13, %11 : vector<8x128xf32>
    %16 = arith.subf %14, %15 : vector<8x128xf32>
    %c0_15 = arith.constant 0 : index
    %c0_16 = arith.constant 0 : index
    %17 = vector.load %arg5[%c0_15, %c0_16] : memref<8x128xf32, #tpu.memory_space<vmem>>, vector<8x128xf32>
    %18 = arith.addf %16, %17 : vector<8x128xf32>
    %19 = arith.mulf %12, %11 : vector<8x128xf32>
    %20 = arith.mulf %13, %9 : vector<8x128xf32>
    %21 = arith.addf %19, %20 : vector<8x128xf32>
    %c0_17 = arith.constant 0 : index
    %c0_18 = arith.constant 0 : index
    %22 = vector.load %arg6[%c0_17, %c0_18] : memref<8x128xf32, #tpu.memory_space<vmem>>, vector<8x128xf32>
    %23 = arith.addf %21, %22 : vector<8x128xf32>
    %24 = arith.mulf %18, %5 : vector<8x128xf32>
    %25 = arith.mulf %23, %7 : vector<8x128xf32>
    %26 = arith.addf %24, %25 : vector<8x128xf32>
    %27 = arith.mulf %1, %26 : vector<8x128xf32>
    %28 = arith.mulf %18, %7 : vector<8x128xf32>
    %29 = arith.mulf %23, %5 : vector<8x128xf32>
    %30 = arith.subf %28, %29 : vector<8x128xf32>
    %31 = arith.mulf %3, %30 : vector<8x128xf32>
    %32 = arith.addf %27, %31 : vector<8x128xf32>
    %cst = arith.constant dense<0.000000e+00> : vector<8xf32>
    %33 = vector.multi_reduction <add>, %32, %cst [1] : vector<8x128xf32> to vector<8xf32>
    %34 = vector.shape_cast %33 : vector<8xf32> to vector<8x1xf32>
    %c0_19 = arith.constant 0 : index
    %c0_20 = arith.constant 0 : index
    %35 = vector.load %arg11[%c0_19, %c0_20] : memref<8x1xf32, #tpu.memory_space<vmem>>, vector<8x1xf32>
    tpu.vector_store %arg11[%c0_19, %c0_20], %34 {strides = array<i32>} : memref<8x1xf32, #tpu.memory_space<vmem>>, vector<8x1xf32>,
    return
  }
  func.func @transform_0(%arg0: i32) -> (i32, i32) {
    %c0_i32 = arith.constant 0 : i32
    %c0_i32_0 = arith.constant 0 : i32
    return %arg0, %c0_i32 : i32, i32
  }
  func.func @transform_1(%arg0: i32) -> (i32, i32) {
    %c0_i32 = arith.constant 0 : i32
    %c0_i32_0 = arith.constant 0 : i32
    return %arg0, %c0_i32 : i32, i32
  }
  func.func @transform_2(%arg0: i32) -> (i32, i32) {
    %c0_i32 = arith.constant 0 : i32
    %c0_i32_0 = arith.constant 0 : i32
    return %arg0, %c0_i32 : i32, i32
  }
  func.func @transform_3(%arg0: i32) -> (i32, i32) {
    %c0_i32 = arith.constant 0 : i32
    %c0_i32_0 = arith.constant 0 : i32
    return %arg0, %c0_i32 : i32, i32
  }
  func.func @transform_4(%arg0: i32) -> (i32, i32) {
    %c0_i32 = arith.constant 0 : i32
    %c0_i32_0 = arith.constant 0 : i32
    return %arg0, %c0_i32 : i32, i32
  }
  func.func @transform_5(%arg0: i32) -> (i32, i32) {
    %c0_i32 = arith.constant 0 : i32
    %c0_i32_0 = arith.constant 0 : i32
    return %arg0, %c0_i32 : i32, i32
  }
  func.func @transform_6(%arg0: i32) -> (i32, i32) {
    %c0_i32 = arith.constant 0 : i32
    %c0_i32_0 = arith.constant 0 : i32
    return %arg0, %c0_i32 : i32, i32
  }
  func.func @transform_7(%arg0: i32) -> (i32, i32) {
    %c0_i32 = arith.constant 0 : i32
    %c0_i32_0 = arith.constant 0 : i32
    return %arg0, %c0_i32 : i32, i32
  }
  func.func @transform_8(%arg0: i32) -> (i32, i32) {
    %c0_i32 = arith.constant 0 : i32
    %c0_i32_0 = arith.constant 0 : i32
    return %arg0, %c0_i32 : i32, i32
  }
  func.func @transform_9(%arg0: i32) -> (i32, i32) {
    %c0_i32 = arith.constant 0 : i32
    %c0_i32_0 = arith.constant 0 : i32
    return %arg0, %c0_i32 : i32, i32
  }
  func.func @transform_10(%arg0: i32) -> (i32, i32) {
    %c0_i32 = arith.constant 0 : i32
    %c0_i32_0 = arith.constant 0 : i32
    return %arg0, %c0_i32 : i32, i32
  }
}

</mosaic_0001>

<bundles_post_ra>
// kernel: tpu_custom_call.1
= control target key start
LH: loop header
LB: loop body
LE: loop exit
PB: predicated region body
PF: predicated region fallthrough
CT: control target
= control target key end

     0   :  { %15 = vsyncpa [#allocation3], 0  ;;  %s352_s0 = inlined_call_operand.hbm [shape: bf16[8,128], index: 0, kind: input, shape index: {}]   ;;  %s353_s1 = inlined_call_operand.hbm [shape: bf16[8,128], index: 1, kind: input, shape index: {}]   ;;  %s354_s2 = inlined_call_operand.hbm [shape: f32[8,128], index: 2, kind: input, shape index: {}]   ;;  %s355_s3 = inlined_call_operand.vmem [shape: f32[8,128], index: 3, kind: input, shape index: {}]   ;;  %s356_s4 = inlined_call_operand.hbm [shape: f32[8,128], index: 4, kind: input, shape index: {}]   ;;  %s357_s5 = inlined_call_operand.vmem [shape: f32[8,128], index: 5, kind: input, shape index: {}]   ;;  %s358_s6 = inlined_call_operand.vmem [shape: bf16[8,128], index: 6, kind: input, shape index: {}]   ;;  %s359_s7 = inlined_call_operand.vmem [shape: bf16[8,128], index: 7, kind: input, shape index: {}]   ;;  %s360_s8 = inlined_call_operand.vmem [shape: bf16[8,128], index: 8, kind: input, shape index: {}]   ;;  %s361_s9 = inlined_call_operand.vmem [shape: bf16[8,128], index: 9, kind: input, shape index: {}]   ;;  %s362_s10 = inlined_call_operand.vmem [shape: f32[8,1], index: 10, kind: output, shape index: {}]  }
   0x1   :  { %16 = vsyncpa [#allocation5], 0 }
   0x2   :  { %17 = vsyncpa [#allocation8], 0  ;;  %s224_s13 = smov [#allocation4]   ;;  %s225_s15 = smov [#allocation2]  }
   0x3   :  { %s34_s14 = sshll.u32 %s224_s13, 4  ;;  %s24_s16 = sshll.u32 %s225_s15, 4  ;;  %s35_s14 = int_to_ptr.vmem [resolvable:$true] %s34_s14  ;;  %s25_s16 = int_to_ptr.vmem [resolvable:$true] %s24_s16 }
   0x4   :  { %s130_s19 = scalar_lea.hbm %s353_s1, 64 }
   0x5   :  { %p131_p0 = scmp.ne.s32.totalorder %s353_s1, %s130_s19  ;;  %p134_p1 = scmp.lt.u32.totalorder %s130_s19, %s353_s1 }
   0x7   :  { %p136_p2 = pnand %p134_p1, %p131_p0 }
   0x9   :  { %139 = shalt.err (!%p136_p2)
}
   0xa   :  { %s140_s24 = scalar_lea.vmem %s35_s14, 64  ;;  %p145_p4 = scmp.lt.s32.totalorder %s35_s14, %s35_s14 }
   0xb   :  { %p141_p3 = scmp.ne.s32.totalorder %s35_s14, %s140_s24  ;;  %p146_p5 = scmp.lt.s32.totalorder %s140_s24, %s140_s24 }
   0xd   :  { %p147_p6 = por %p146_p5, %p145_p4 }
   0xf   :  { %p148_p7 = pnand %p147_p6, %p141_p3 }
  0x11   :  { %151 = shalt.err (!%p148_p7)
}
  0x12   :  { %37 = dma.hbm_to_vmem [thread:$0]  %s353_s1, 64, %s35_s14, [#allocation5]  }
  0x13   :  { %s152_s29 = scalar_lea.hbm %s352_s0, 64 }
  0x14   :  { %p153_p8 = scmp.ne.s32.totalorder %s352_s0, %s152_s29  ;;  %p156_p9 = scmp.lt.u32.totalorder %s152_s29, %s352_s0 }
  0x16   :  { %p158_p10 = pnand %p156_p9, %p153_p8 }
  0x18   :  { %161 = shalt.err (!%p158_p10)
}
  0x19   :  { %s162_s15 = scalar_lea.vmem %s25_s16, 64  ;;  %p167_p12 = scmp.lt.s32.totalorder %s25_s16, %s25_s16 }
  0x1a   :  { %p163_p11 = scmp.ne.s32.totalorder %s25_s16, %s162_s15  ;;  %p168_p13 = scmp.lt.s32.totalorder %s162_s15, %s162_s15 }
  0x1c   :  { %p169_p0 = por %p168_p13, %p167_p12 }
  0x1e   :  { %p170_p1 = pnand %p169_p0, %p163_p11 }
  0x20   :  { %173 = shalt.err (!%p170_p1)
}
  0x21   :  { %27 = dma.hbm_to_vmem [thread:$0]  %s352_s0, 64, %s25_s16, [#allocation3]  }
  0x22   :  { %s226_s17 = smov [#allocation6]   ;;  %s227_s19 = smov [#allocation7]  }
  0x23   :  { %s44_s18 = sshll.u32 %s226_s17, 4  ;;  %s56_s20 = sshll.u32 %s227_s19, 4  ;;  %s45_s18 = int_to_ptr.vmem [resolvable:$true] %s44_s18  ;;  %s57_s20 = int_to_ptr.vmem [resolvable:$true] %s56_s20 }
  0x24   :  { %s174_s23 = scalar_lea.hbm %s354_s2, 128 }
  0x25   :  { %p175_p2 = scmp.ne.s32.totalorder %s354_s2, %s174_s23  ;;  %p178_p3 = scmp.lt.u32.totalorder %s174_s23, %s354_s2 }
  0x27   :  { %p180_p4 = pnand %p178_p3, %p175_p2 }
  0x29   :  { %183 = shalt.err (!%p180_p4)
}
  0x2a   :  { %s184_s0 = scalar_lea.vmem %s45_s18, 128  ;;  %p189_p6 = scmp.lt.s32.totalorder %s45_s18, %s45_s18 }
  0x2b   :  { %p185_p5 = scmp.ne.s32.totalorder %s45_s18, %s184_s0  ;;  %p190_p7 = scmp.lt.s32.totalorder %s184_s0, %s184_s0 }
  0x2d   :  { %p191_p8 = por %p190_p7, %p189_p6 }
  0x2f   :  { %p192_p9 = pnand %p191_p8, %p185_p5 }
  0x31   :  { %195 = shalt.err (!%p192_p9)
}
  0x32   :  { %47 = dma.hbm_to_vmem [thread:$0]  %s354_s2, 128, %s45_s18, [#allocation5]  }
  0x33   :  { %s196_s11 = scalar_lea.hbm %s356_s4, 128 }
  0x34   :  { %p197_p10 = scmp.ne.s32.totalorder %s356_s4, %s196_s11  ;;  %p200_p11 = scmp.lt.u32.totalorder %s196_s11, %s356_s4 }
  0x36   :  { %p202_p12 = pnand %p200_p11, %p197_p10 }
  0x38   :  { %205 = shalt.err (!%p202_p12)
}
  0x39   :  { %s206_s14 = scalar_lea.vmem %s57_s20, 128  ;;  %p211_p0 = scmp.lt.s32.totalorder %s57_s20, %s57_s20 }
  0x3a   :  { %p207_p13 = scmp.ne.s32.totalorder %s57_s20, %s206_s14  ;;  %p212_p1 = scmp.lt.s32.totalorder %s206_s14, %s206_s14 }
  0x3c   :  { %p213_p2 = por %p212_p1, %p211_p0 }
  0x3e   :  { %p214_p3 = pnand %p213_p2, %p207_p13 }
  0x40   :  { %217 = shalt.err (!%p214_p3)
}
  0x41   :  { %59 = dma.hbm_to_vmem [thread:$0]  %s356_s4, 128, %s57_s20, [#allocation8]  }
  0x42   :  { %218 = dma.done.wait [#allocation3], 64  }
  0x43   :  { %219 = vsyncadd [#allocation3], 4294967232 }
  0x44   :  { %220 = dma.done.wait [#allocation5], 192  }
  0x45   :  { %221 = vsyncadd [#allocation5], 4294967104 }
  0x46   :  { %222 = dma.done.wait [#allocation8], 128  }
  0x47   :  { %223 = vsyncadd [#allocation8], 4294967168  ;;  %v90_v0 = vld [vmem:[%s358_s6] sm:$0xf]  ;;  %v99_v12 = vld [vmem:[#allocation7] sm:$0xff]  ;;  %vm117_vm0 = vcmask 7168  }
  0x48   :  { %v92_v1 = vld [vmem:[%s359_s7] sm:$0xf]  ;;  %v91_v2 = vunpack.c.l.bf16 %v90_v0  ;;  %v82_v14 = vld [vmem:[#allocation2] sm:$0xf]  ;;  %v84_v15 = vld [vmem:[#allocation4] sm:$0xf] }
  0x49   :  { %v93_v3 = vunpack.c.l.bf16 %v92_v1  ;;  %v94_v4 = vld [vmem:[#allocation6] sm:$0xff]  ;;  %v83_v22 = vunpack.c.l.bf16 %v82_v14  ;;  %v85_v23 = vunpack.c.l.bf16 %v84_v15 }
  0x4a   :  { %v95_v5 = vld [vmem:[%s355_s3] sm:$0xff]  ;;  %v96_v8 = vmul.f32 %v94_v4, %v91_v2 }
  0x4b   :  { %v86_v6 = vld [vmem:[%s360_s8] sm:$0xf]  ;;  %v97_v9 = vmul.f32 %v95_v5, %v93_v3  ;;  %v101_v10 = vmul.f32 %v94_v4, %v93_v3  ;;  %v102_v11 = vmul.f32 %v95_v5, %v91_v2 }
  0x4c   :  { %v88_v7 = vld [vmem:[%s361_s9] sm:$0xf]  ;;  %v87_v16 = vunpack.c.l.bf16 %v86_v6 }
  0x4d   :  { %v104_v13 = vld [vmem:[%s357_s5] sm:$0xff]  ;;  %v89_v17 = vunpack.c.l.bf16 %v88_v7  ;;  %v98_v18 = vsub.f32 %v96_v8, %v97_v9  ;;  %v103_v19 = vadd.f32 %v102_v11, %v101_v10 }
  0x4f   :  { %v100_v20 = vadd.f32 %v99_v12, %v98_v18  ;;  %v105_v21 = vadd.f32 %v104_v13, %v103_v19 }
  0x51   :  { %v106_v24 = vmul.f32 %v100_v20, %v87_v16  ;;  %v107_v25 = vmul.f32 %v105_v21, %v89_v17  ;;  %v110_v26 = vmul.f32 %v100_v20, %v89_v17  ;;  %v111_v27 = vmul.f32 %v105_v21, %v87_v16 }
  0x53   :  { %v108_v28 = vadd.f32 %v107_v25, %v106_v24  ;;  %v112_v29 = vsub.f32 %v110_v26, %v111_v27 }
  0x55   :  { %v109_v30 = vmul.f32 %v108_v28, %v83_v22  ;;  %v113_v31 = vmul.f32 %v112_v29, %v85_v23 }
  0x57   :  { %v114_v32 = vadd.f32 %v113_v31, %v109_v30 }
  0x59   :  { %115 = vadd.xlane.f32.xlu0 %v114_v32 }
  0xe6   :  { %v116_v33 = vpop.xlane.xlu0 %115 }
  0xe7   :  { %118 = vst.msk [vmem:[%s362_s10] sm:$0xff] %vm117_vm0, %v116_v33 }
  0xe8   :  { %123 = vsyncpa [#allocation3], 1 }
  0xe9   :  { %124 = vsyncpa [#allocation5], 1 }
  0xea   :  { %125 = vsyncpa [#allocation8], 1 }

</bundles_post_ra>
